<compile_context>
chip_gen: v6e
topology: v6e:2x2x1
jax: 0.10.0
libtpu: 0.0.40
codegen_flags: <defaults>
</compile_context>

<pallas_src>
import jax
import jax.numpy as jnp
from jax.experimental import pallas as pl
from jax.experimental.pallas import tpu as pltpu

_LANE_CANDIDATES = (1024, 512, 256, 128)   # widest lane-dense layout that divides n
_SMALL_INPUT_BYTES = 2 << 20               # below this, plain XLA wins (fuses for free)
_TARGET_BLOCK_BYTES = 4 << 20              # ~4 MiB per block; 4 live buffers = 16 MiB
_VMEM_LIMIT_BYTES = 48 << 20               # explicit scoped-VMEM budget (< v7x 64 MiB phys)


def _relu_kernel(x_ref, o_ref):
    # Single vld + vmax-with-splat-0 + vst per vreg on the VPU.
    o_ref[...] = jnp.maximum(x_ref[...], 0)


def _relu_pallas_2d(x2d: jax.Array, *, in_place: bool = False) -> jax.Array:
    """ReLU of a (rows, lanes) slab via pallas_call. lanes % 128 == 0."""
    rows, lanes = x2d.shape
    dtype = x2d.dtype
    itemsize = jnp.dtype(dtype).itemsize
    # dtype-native sublane count: 8 (32-bit), 16 (bf16/fp16), 32 (int8/fp8).
    sublanes = max(8, 32 // itemsize)
    bytes_per_row = lanes * itemsize

    if rows <= sublanes:
        # Single full-extent block (block dims == array dims is always legal).
        block_rows = rows
    else:
        # ~4 MiB target blocks ...
        target_rows = max(sublanes, _TARGET_BLOCK_BYTES // bytes_per_row)
        steps = pl.cdiv(rows, target_rows)
        # ... rounded to an EVEN number of balanced grid steps so a v7x
        # megacore ("parallel" axis) gives each TensorCore the same work.
        if rows >= 2 * sublanes:
            steps = max(2, steps)
            if steps % 2:
                steps += 1
        block_rows = pl.cdiv(pl.cdiv(rows, steps), sublanes) * sublanes
        if block_rows >= rows:
            block_rows = rows          # degenerate: one full-extent block

    grid = (pl.cdiv(rows, block_rows),)
    # NOTE: when rows % block_rows != 0 the last block is partial; Pallas
    # masks the boundary loads/stores — no padding needed.

    return pl.pallas_call(
        _relu_kernel,
        out_shape=jax.ShapeDtypeStruct((rows, lanes), dtype),
        grid_spec=pltpu.PrefetchScalarGridSpec(
            num_scalar_prefetch=0,
            grid=grid,
            in_specs=[pl.BlockSpec((block_rows, lanes), lambda i: (i, 0))],
            out_specs=pl.BlockSpec((block_rows, lanes), lambda i: (i, 0)),
        ),
        compiler_params=pltpu.CompilerParams(
            dimension_semantics=("parallel",),
            vmem_limit_bytes=_VMEM_LIMIT_BYTES,
        ),
        cost_estimate=pl.CostEstimate(
            flops=rows * lanes,
            transcendentals=0,
            bytes_accessed=2 * rows * lanes * itemsize,
        ),
        input_output_aliases=({0: 0} if in_place else {}),
    )(x2d)


def relu_pallas(x: jax.Array, *, force_pallas: bool = False,
                in_place: bool = False) -> jax.Array:
    """ReLU forward matching torch.nn.ReLU()(x) for any shape/dtype.

    in_place=True aliases the input buffer to the output (pass a donated array
    to actually reuse it); correctness is unaffected either way.
    """
    orig_shape = x.shape
    n = x.size
    if n == 0:
        return x
    itemsize = jnp.dtype(x.dtype).itemsize

    # Tiny-input dispatch: pallas_call launch + pipeline prologue overhead
    # dwarfs the ~us of HBM traffic; XLA fuses the maximum into neighbors.
    if not force_pallas and n * itemsize < _SMALL_INPUT_BYTES:
        return jnp.maximum(x, 0)

    aligned = (n // 128) * 128
    if aligned == 0:
        return jnp.maximum(x, 0)

    if aligned == n:
        # Common case: element count is a multiple of 128. Pure reshape
        # (bitcast) in, reshape out — no pad, no slice, no extra HBM traffic.
        lanes = next(w for w in _LANE_CANDIDATES if n % w == 0)
        out2d = _relu_pallas_2d(x.reshape(n // lanes, lanes), in_place=in_place)
        return out2d.reshape(orig_shape)

    # Ragged tail (n % 128 != 0).
    if not force_pallas:
        # Any prefix-slice / pad wrapper around the kernel adds full-tensor
        # HBM copies; a standalone XLA elementwise op is already at the 1x
        # read + 1x write roofline, so it is the fastest correct choice here.
        return jnp.maximum(x, 0)

    # Forced Pallas on a ragged shape: aligned prefix through the kernel,
    # <128-element tail via a tiny jnp.maximum (no whole-tensor pad+slice).
    x_flat = x.reshape(-1)
    lanes = next(w for w in _LANE_CANDIDATES if aligned % w == 0)
    prefix = _relu_pallas_2d(
        x_flat[:aligned].reshape(aligned // lanes, lanes), in_place=in_place)
    tail = jnp.maximum(x_flat[aligned:], 0)
    return jnp.concatenate([prefix.reshape(-1), tail]).reshape(orig_shape)


if __name__ == "__main__":
    key = jax.random.PRNGKey(0)
    k0, k1, k2 = jax.random.split(key, 3)

    # 1) Module-spec input (NCHW, like PyTorch): tiny -> auto-dispatch XLA path.
    x0 = jax.random.normal(k0, (2, 4, 16, 16), dtype=jnp.float32)
    y0 = jax.block_until_ready(relu_pallas(x0))
    assert y0.shape == x0.shape and y0.dtype == x0.dtype
    assert jnp.array_equal(y0, jnp.maximum(x0, 0.0)), "auto-dispatch mismatch"

    # 2) Same tiny input forced through the Pallas kernel (single (2,1024) block).
    y0p = jax.block_until_ready(relu_pallas(x0, force_pallas=True))
    assert y0p.shape == x0.shape and y0p.dtype == x0.dtype
    assert jnp.array_equal(y0p, jnp.maximum(x0, 0.0)), "pallas small mismatch"

    # 3) Larger f32 input: Pallas path, 1024-lane slab, two balanced 4 MiB blocks.
    x1 = jax.random.normal(k1, (8, 32, 64, 128), dtype=jnp.float32)
    y1 = jax.block_until_ready(relu_pallas(x1))
    assert y1.shape == x1.shape and y1.dtype == x1.dtype
    assert jnp.array_equal(y1, jnp.maximum(x1, 0.0)), "pallas large mismatch"

    # 3b) Donated / aliased variant (input buffer reused for the output).
    relu_donated = jax.jit(lambda t: relu_pallas(t, in_place=True),
                           donate_argnums=0)
    y1a = jax.block_until_ready(relu_donated(x1 + 0.0))
    assert jnp.array_equal(y1a, jnp.maximum(x1, 0.0)), "aliased mismatch"

    # 4) Ragged bf16 input: aligned prefix through the kernel + tiny tail max.
    x2 = jax.random.normal(k2, (3, 5, 17, 19), dtype=jnp.bfloat16)
    y2 = jax.block_until_ready(relu_pallas(x2, force_pallas=True))
    assert y2.shape == x2.shape and y2.dtype == x2.dtype
    assert jnp.array_equal(y2, jnp.maximum(x2, 0)), "pallas bf16 mismatch"

    print("KERNEL_OK")
</pallas_src>

<mosaic_0001>
module attributes {stable_mosaic.version = 11 : i64} {
  func.func @_relu_kernel(%arg0: i32, %arg1: memref<2x1024xf32, #tpu.memory_space<vmem>>, %arg2: memref<2x1024xf32, #tpu.memory_space<vmem>>) attributes {dimension_semantics = [#tpu.dimension_semantics<parallel>], iteration_bounds = array<i64: 1>, scalar_prefetch = 0 : i64, scratch_operands = 0 : i64, tpu.core_type = #tpu.core_type<tc>, window_params = [{transform_indices = @transform_0, window_bounds = array<i64: 2, 1024>}, {transform_indices = @transform_1, window_bounds = array<i64: 2, 1024>}]} {
    %c0 = arith.constant 0 : index
    %c0_0 = arith.constant 0 : index
    %0 = vector.load %arg1[%c0, %c0_0] : memref<2x1024xf32, #tpu.memory_space<vmem>>, vector<2x1024xf32>
    %cst = arith.constant 0.000000e+00 : f32
    %1 = vector.broadcast %cst : f32 to vector<2x1024xf32>
    %2 = arith.maximumf %0, %1 : vector<2x1024xf32>
    %c0_1 = arith.constant 0 : index
    %c0_2 = arith.constant 0 : index
    %3 = vector.load %arg2[%c0_1, %c0_2] : memref<2x1024xf32, #tpu.memory_space<vmem>>, vector<2x1024xf32>
    tpu.vector_store %arg2[%c0_1, %c0_2], %2 {strides = array<i32>} : memref<2x1024xf32, #tpu.memory_space<vmem>>, vector<2x1024xf32>,
    return
  }
  func.func @transform_0(%arg0: i32) -> (i32, i32) {
    %c0_i32 = arith.constant 0 : i32
    %c0_i32_0 = arith.constant 0 : i32
    return %arg0, %c0_i32 : i32, i32
  }
  func.func @transform_1(%arg0: i32) -> (i32, i32) {
    %c0_i32 = arith.constant 0 : i32
    %c0_i32_0 = arith.constant 0 : i32
    return %arg0, %c0_i32 : i32, i32
  }
}

</mosaic_0001>

<bundles_post_ra>
// kernel: tpu_custom_call.1
= control target key start
LH: loop header
LB: loop body
LE: loop exit
PB: predicated region body
PF: predicated region fallthrough
CT: control target
= control target key end

     0   :  { %6 = vsyncpa [#allocation3], 0  ;;  %s106_s0 = inlined_call_operand.hbm [shape: f32[2,1024], index: 0, kind: input, shape index: {}]   ;;  %s107_s1 = inlined_call_operand.hbm [shape: f32[2,1024], index: 1, kind: output, shape index: {}]  }
   0x1   :  { %7 = vsyncpa [#allocation4], 0  ;;  %s88_s6 = smov [#allocation2]  }
   0x2   :  { %s14_s7 = sshll.u32 %s88_s6, 4  ;;  %s15_s7 = int_to_ptr.vmem [resolvable:$true] %s14_s7 }
   0x3   :  { %s52_s8 = scalar_lea.vmem %s15_s7, 256  ;;  %p57_p1 = scmp.lt.s32.totalorder %s15_s7, %s15_s7 }
   0x4   :  { %p53_p0 = scmp.ne.s32.totalorder %s15_s7, %s52_s8  ;;  %p58_p2 = scmp.lt.s32.totalorder %s52_s8, %s52_s8 }
   0x6   :  { %p59_p3 = por %p58_p2, %p57_p1 }
   0x8   :  { %p60_p4 = pnand %p59_p3, %p53_p0 }
   0xa   :  { %63 = shalt.err (!%p60_p4)
}
   0xb   :  { %17 = dma.hbm_to_vmem [thread:$0]  %s106_s0, 256, %s15_s7, [#allocation3]  }
   0xc   :  { %84 = dma.done.wait [#allocation3], 256  }
   0xd   :  { %85 = vsyncadd [#allocation3], 4294967040  ;;  %s89_s11 = smov [#allocation5]   ;;  %v21_v0 = vld [vmem:[#allocation2] sm:$0xff]  ;;  %v22_v1 = vld [vmem:[#allocation2 + $0x8] sm:$0xff] }
   0xe   :  { %s33_s12 = sshll.u32 %s89_s11, 4  ;;  %v23_v2 = vmax.f32 %v21_v0, 0.0  ;;  %v24_v3 = vmax.f32 %v22_v1, 0.0  ;;  %s34_s12 = int_to_ptr.vmem [resolvable:$true] %s33_s12 }
   0xf   :  { %s64_s13 = scalar_lea.vmem %s34_s12, 256  ;;  %p69_p6 = scmp.lt.s32.totalorder %s34_s12, %s34_s12 }
  0x10   :  { %25 = vst [vmem:[#allocation5] sm:$0xff] %v23_v2  ;;  %26 = vst [vmem:[#allocation5 + $0x8] sm:$0xff] %v24_v3  ;;  %p65_p5 = scmp.ne.s32.totalorder %s34_s12, %s64_s13  ;;  %p70_p7 = scmp.lt.s32.totalorder %s64_s13, %s64_s13 }
  0x12   :  { %p71_p8 = por %p70_p7, %p69_p6 }
  0x14   :  { %p72_p9 = pnand %p71_p8, %p65_p5 }
  0x16   :  { %75 = shalt.err (!%p72_p9)
}
  0x17   :  { %36 = dma.vmem_to_hbm [thread:$0]  %s34_s12, 256, %s107_s1, [#allocation4]  }
  0x18   :  { %86 = dma.done.wait [#allocation4], 256  }
  0x19   :  { %87 = vsyncadd [#allocation4], 4294967040 }
  0x1a   :  { %40 = vsyncpa [#allocation3], 1 }
  0x1b   :  { %41 = vsyncpa [#allocation4], 1 }

</bundles_post_ra>
